<compile_context>
chip_gen: v7x
topology: tpu7x:2x2x1
jax: 0.10.0
libtpu: 0.0.40
codegen_flags: <defaults>
</compile_context>

<pallas_src>
import functools
import math

import jax
import jax.numpy as jnp
from jax.experimental import pallas as pl
from jax.experimental.pallas import tpu as pltpu

LANE = 128          # TPU lane width: all last dims are padded to a multiple.


def _round_up(x, m):
    return ((x + m - 1) // m) * m


def _pad_last(a, n):
    pad = [(0, 0)] * (a.ndim - 1) + [(0, n - a.shape[-1])]
    return jnp.pad(a, pad)


def _pad_last2(a, r, c):
    pad = ([(0, 0)] * (a.ndim - 2)
           + [(0, r - a.shape[-2]), (0, c - a.shape[-1])])
    return jnp.pad(a, pad)


# ----------------------------- kernels ---------------------------------------


def _layernorm(x, g, b, d_true, eps=1e-5):
    """LayerNorm over a zero-padded last dim, normalizing by the true width.

    x is exactly zero in the padded lanes, so plain sums are correct as long
    as we divide by d_true; g/b are zero-padded so padded lanes stay zero.
    """
    inv_d = 1.0 / d_true
    mu = jnp.sum(x, axis=-1, keepdims=True) * inv_d
    ms = jnp.sum(x * x, axis=-1, keepdims=True) * inv_d
    var = ms - mu * mu
    return (x - mu) * jax.lax.rsqrt(var + eps) * g + b


def embed_kernel(src_ref, emb_w_ref, emb_b_ref, pe_ref, out_ref):
    """Feature embedding + positional encoding for one batch block."""
    x0 = jnp.dot(src_ref[...].astype(jnp.bfloat16), emb_w_ref[...],
                 preferred_element_type=jnp.float32)
    out_ref[...] = x0 + emb_b_ref[...] + pe_ref[...]


def transformer_kernel(x0_ref, qkvw_ref, qkvb_ref, ow_ref, ob_ref,
                       f1w_ref, f1b_ref, f2w_ref, f2b_ref,
                       n1g_ref, n1b_ref, n2g_ref, n2b_ref,
                       hw_ref, hb_ref,
                       out_ref,
                       x_scr,
                       *, batch_block, seq_len, num_heads, head_dim,
                       d_model, d_pad):
    layer = pl.program_id(1)
    num_layers = pl.num_programs(1)
    M = batch_block * seq_len                 # rows handled by this program
    Dp = d_pad
    scale = 1.0 / math.sqrt(head_dim)

    # ---- load the embedded input into the persistent activation scratch ----
    @pl.when(layer == 0)
    def _():
        x_scr[...] = x0_ref[...]

    x = x_scr[...]                            # [M, Dp] f32 (persistent)
    xb = x.astype(jnp.bfloat16)

    # ---- fused Q/K/V projection: one [M, Dp] x [Dp, 3*Dp] matmul ----
    qkv = jnp.dot(xb, qkvw_ref[0],
                  preferred_element_type=jnp.float32) + qkvb_ref[0]

    # ---- attention core per head at true head_dim (tiny: S x S scores) ----
    ctx_parts = []
    for h in range(num_heads):
        lo = h * head_dim
        qh = (qkv[:, lo:lo + head_dim] * scale).reshape(
            batch_block, seq_len, head_dim)
        kh = qkv[:, Dp + lo:Dp + lo + head_dim].reshape(
            batch_block, seq_len, head_dim)
        vh = qkv[:, 2 * Dp + lo:2 * Dp + lo + head_dim].reshape(
            batch_block, seq_len, head_dim)
        s = jnp.einsum('bqe,bke->bqk', qh, kh,
                       preferred_element_type=jnp.float32)    # [b, S, S] f32
        s = s - jnp.max(s, axis=-1, keepdims=True)
        p = jnp.exp(s)
        p = p / jnp.sum(p, axis=-1, keepdims=True)            # exact softmax
        ctx = jnp.einsum('bqk,bke->bqe', p, vh,
                         preferred_element_type=jnp.float32)  # [b, S, Hd]
        ctx_parts.append(ctx.reshape(M, head_dim))

    # ---- output projection: single [M, D] x [D, Dp] matmul over concat ----
    ctx_all = jnp.concatenate(ctx_parts, axis=-1)             # [M, D]
    attn = jnp.dot(ctx_all.astype(jnp.bfloat16), ow_ref[0],
                   preferred_element_type=jnp.float32) + ob_ref[0]

    x = _layernorm(x + attn, n1g_ref[0], n1b_ref[0], d_model)

    # ---- feed forward ----
    ff = jnp.dot(x.astype(jnp.bfloat16), f1w_ref[0],
                 preferred_element_type=jnp.float32) + f1b_ref[0]
    ff = jnp.maximum(ff, 0.0)
    ff = jnp.dot(ff.astype(jnp.bfloat16), f2w_ref[0],
                 preferred_element_type=jnp.float32) + f2b_ref[0]

    x = _layernorm(x + ff, n2g_ref[0], n2b_ref[0], d_model)
    x_scr[...] = x

    # ---- merged action/value heads on the last timestep (last step only) ---
    @pl.when(layer == num_layers - 1)
    def _():
        x_last = x.reshape(batch_block, seq_len, Dp)[:, seq_len - 1, :]
        out = jnp.dot(x_last.astype(jnp.bfloat16), hw_ref[...],
                      preferred_element_type=jnp.float32) + hb_ref[...]
        out_ref[0] = out                       # [batch_block, 128] lane-dense


# ----------------------------- wrapper ---------------------------------------


def _pick_batch_block(B, S, target_rows=256):
    """Largest divisor of B whose block has ~target_rows matmul rows."""
    bb = max(1, min(B, max(1, target_rows // max(S, 1))))
    while bb > 1 and B % bb != 0:
        bb -= 1
    # Prefer an even number of batch blocks (one per v7x TensorCore) when the
    # halved block still fills the MXU row dimension.
    if B // bb == 1 and bb % 2 == 0 and (bb // 2) * S >= target_rows:
        bb //= 2
    return bb


def financial_transformer_forward(src, params, *, num_heads, batch_block=None):
    B, S, F = src.shape
    L, D, _ = params['qw'].shape
    FF = params['f1w'].shape[2]
    A = params['aw'].shape[1]
    Hd = D // num_heads
    assert Hd * num_heads == D
    assert A + 1 <= LANE

    if batch_block is None:
        batch_block = _pick_batch_block(B, S)
    assert B % batch_block == 0
    nb = B // batch_block
    Mb = batch_block * S
    assert nb == 1 or Mb % 8 == 0, \
        "batch_block*seq_len must be a multiple of 8 when tiling the batch"

    Fp = _round_up(F, LANE)
    Dp = _round_up(D, LANE)
    FFp = _round_up(FF, LANE)
    wdt = jnp.bfloat16                       # matmul-operand dtype (MXU path)

    # ---- pad / repack parameters once, outside the kernels ----
    src2 = _pad_last(src.reshape(B * S, F), Fp)                       # [B*S, Fp]
    emb_w = _pad_last2(params['emb_w'], Fp, Dp).astype(wdt)           # [Fp, Dp]
    emb_b = _pad_last(params['emb_b'].reshape(1, D), Dp)              # [1, Dp]
    pe = _pad_last(params['pe'][:S], Dp)                              # [S, Dp]
    pe_tile = jnp.tile(pe, (batch_block, 1))                          # [Mb, Dp]

    def pad_sq(w):                           # [L, D, D] -> [L, Dp, Dp]
        return _pad_last2(w, Dp, Dp)

    # fused QKV weight: columns [0:Dp]=Wq, [Dp:2Dp]=Wk, [2Dp:3Dp]=Wv
    qkvw = jnp.concatenate([pad_sq(params['qw']), pad_sq(params['kw']),
                            pad_sq(params['vw'])], axis=-1).astype(wdt)
    qkvb = jnp.concatenate([_pad_last(params['qb'].reshape(L, 1, D), Dp),
                            _pad_last(params['kb'].reshape(L, 1, D), Dp),
                            _pad_last(params['vb'].reshape(L, 1, D), Dp)],
                           axis=-1)
    ow = _pad_last(params['ow'], Dp).astype(wdt)                      # [L, D, Dp]
    ob = _pad_last(params['ob'].reshape(L, 1, D), Dp)
    f1w = _pad_last2(params['f1w'], Dp, FFp).astype(wdt)
    f1b = _pad_last(params['f1b'].reshape(L, 1, FF), FFp)
    f2w = _pad_last2(params['f2w'], FFp, Dp).astype(wdt)
    f2b = _pad_last(params['f2b'].reshape(L, 1, D), Dp)
    n1g = _pad_last(params['n1g'].reshape(L, 1, D), Dp)   # zero-padded gamma
    n1b = _pad_last(params['n1b'].reshape(L, 1, D), Dp)
    n2g = _pad_last(params['n2g'].reshape(L, 1, D), Dp)
    n2b = _pad_last(params['n2b'].reshape(L, 1, D), Dp)

    # merged, lane-dense action/value head: columns [0:A] actions, [A] value
    hw = jnp.zeros((Dp, LANE), jnp.float32)
    hw = hw.at[:D, :A].set(params['aw'])
    hw = hw.at[:D, A:A + 1].set(params['vhw'])
    hw = hw.astype(wdt)
    hb = jnp.zeros((1, LANE), jnp.float32)
    hb = hb.at[:, :A].set(params['ab'])
    hb = hb.at[:, A:A + 1].set(params['vhb'])

    # ---- stage 1: feature embedding + positional encoding (tiny kernel) ----
    x0 = pl.pallas_call(
        embed_kernel,
        out_shape=jax.ShapeDtypeStruct((B * S, Dp), jnp.float32),
        grid_spec=pltpu.PrefetchScalarGridSpec(
            num_scalar_prefetch=0,
            grid=(nb,),
            in_specs=[pl.BlockSpec((Mb, Fp), lambda b: (b, 0)),
                      pl.BlockSpec((Fp, Dp), lambda b: (0, 0)),
                      pl.BlockSpec((1, Dp), lambda b: (0, 0)),
                      pl.BlockSpec((Mb, Dp), lambda b: (0, 0))],
            out_specs=pl.BlockSpec((Mb, Dp), lambda b: (b, 0))),
        compiler_params=pltpu.CompilerParams(
            dimension_semantics=("parallel",)),
    )(src2, emb_w, emb_b, pe_tile)

    # ---- stage 2: layer loop with per-layer weight streaming ----
    def per_layer(shape):
        return pl.BlockSpec((1,) + shape, lambda b, l: (l, 0, 0))

    in_specs = [
        pl.BlockSpec((Mb, Dp), lambda b, l: (b, 0)),            # embedded input
        per_layer((Dp, 3 * Dp)), per_layer((1, 3 * Dp)),        # fused QKV
        per_layer((D, Dp)), per_layer((1, Dp)),                 # out projection
        per_layer((Dp, FFp)), per_layer((1, FFp)),              # ff1
        per_layer((FFp, Dp)), per_layer((1, Dp)),               # ff2
        per_layer((1, Dp)), per_layer((1, Dp)),                 # norm1
        per_layer((1, Dp)), per_layer((1, Dp)),                 # norm2
        pl.BlockSpec((Dp, LANE), lambda b, l: (0, 0)),          # merged heads W
        pl.BlockSpec((1, LANE), lambda b, l: (0, 0)),           # merged heads b
    ]
    out_spec = pl.BlockSpec((1, batch_block, LANE), lambda b, l: (b, 0, 0))

    kernel = functools.partial(
        transformer_kernel, batch_block=batch_block, seq_len=S,
        num_heads=num_heads, head_dim=Hd, d_model=D, d_pad=Dp)

    # ---- re-derived VMEM budget (streamed weights double-buffered + rest) ---
    layer_arrays = (qkvw, qkvb, ow, ob, f1w, f1b, f2w, f2b, n1g, n1b, n2g, n2b)
    per_layer_bytes = sum(int(a.size // L) * a.dtype.itemsize
                          for a in layer_arrays)
    resident_bytes = (2 * Mb * Dp * 4                           # x0 block
                      + 2 * (hw.size * hw.dtype.itemsize
                             + hb.size * hb.dtype.itemsize)     # head weights
                      + 2 * batch_block * LANE * 4)             # output block
    temp_bytes = Mb * (3 * Dp + FFp + 8 * Dp) * 4               # matmul temps
    vmem_need = (2 * per_layer_bytes + resident_bytes
                 + Mb * Dp * 4 + temp_bytes)
    vmem_need = int(vmem_need * 1.5) + (4 << 20)                # Mosaic headroom
    try:
        info = pltpu.get_tpu_info()
        vmem_cap = int(getattr(info, "vmem_capacity_bytes", 64 << 20))
    except Exception:  # pragma: no cover - conservative fallback (v7x per-TC)
        vmem_cap = 64 << 20
    vmem_limit = int(min(max(vmem_need, 32 << 20), int(0.9 * vmem_cap)))

    flops_layer = (2 * B * S * Dp * 3 * Dp                      # fused QKV
                   + 2 * 2 * B * num_heads * S * S * Hd         # scores + ctx
                   + 2 * B * S * D * Dp                         # out projection
                   + 2 * 2 * B * S * Dp * FFp)                  # feed forward
    cost = pl.CostEstimate(
        flops=L * flops_layer + 2 * B * Dp * LANE,
        transcendentals=L * B * num_heads * S * S,
        bytes_accessed=(nb * L * per_layer_bytes                # weights re-streamed per block
                        + B * S * Dp * 4                        # x0 read
                        + hw.size * hw.dtype.itemsize
                        + hb.size * hb.dtype.itemsize
                        + B * LANE * 4))                        # output write

    out = pl.pallas_call(
        kernel,
        out_shape=jax.ShapeDtypeStruct((nb, batch_block, LANE), jnp.float32),
        grid_spec=pltpu.PrefetchScalarGridSpec(
            num_scalar_prefetch=0,
            grid=(nb, L),
            in_specs=in_specs,
            out_specs=out_spec,
            scratch_shapes=[pltpu.VMEM((Mb, Dp), jnp.float32)]),
        compiler_params=pltpu.CompilerParams(
            dimension_semantics=("parallel", "arbitrary"),
            vmem_limit_bytes=vmem_limit),
        cost_estimate=cost,
    )(x0, qkvw, qkvb, ow, ob, f1w, f1b, f2w, f2b,
      n1g, n1b, n2g, n2b, hw, hb)

    out = out.reshape(B, LANE)
    action_logits = out[:, :A]
    state_values = out[:, A:A + 1]

    # KL divergence of the Bayesian posteriors (parameter-only reduction, glue).
    kl = _total_kl(params)
    return action_logits, state_values, kl


# ----------------------------- KL (plain JAX glue) ----------------------------


_BAYES_KEYS = ('emb_w', 'emb_b', 'qw', 'qb', 'kw', 'kb', 'vw', 'vb',
               'ow', 'ob', 'f1w', 'f1b', 'f2w', 'f2b',
               'aw', 'ab', 'vhw', 'vhb')


def _gaussian_kl(mu, rho, prior_sigma):
    sigma = jnp.log1p(jnp.exp(rho))
    return jnp.sum(jnp.log(prior_sigma / sigma)
                   + (sigma ** 2 + mu ** 2) / (2.0 * prior_sigma ** 2) - 0.5)


def _total_kl(params):
    prior_sigma = params['prior_sigma']
    total = jnp.float32(0.0)
    for k in _BAYES_KEYS:
        total = total + _gaussian_kl(params[k], params[k + '_rho'], prior_sigma)
    return total


# ----------------------------- param init ------------------------------------


def _xavier(key, shape):
    fan_in, fan_out = shape[-2], shape[-1]
    limit = math.sqrt(6.0 / (fan_in + fan_out))
    return jax.random.uniform(key, shape, jnp.float32, -limit, limit)


def init_params(key, *, n_features, d_model, num_heads, num_layers,
                dim_feedforward, n_actions, seq_len, prior_sigma=0.1):
    ks = iter(jax.random.split(key, 8 * num_layers + 16))
    p = {}
    p['prior_sigma'] = prior_sigma
    p['emb_w'] = _xavier(next(ks), (n_features, d_model))
    p['emb_b'] = jnp.zeros((1, d_model), jnp.float32)

    # positional encoding buffer (first seq_len rows)
    position = jnp.arange(seq_len, dtype=jnp.float32)[:, None]
    div_term = jnp.exp(jnp.arange(0, d_model, 2, dtype=jnp.float32)
                       * (-math.log(10000.0) / d_model))
    pe = jnp.zeros((seq_len, d_model), jnp.float32)
    pe = pe.at[:, 0::2].set(jnp.sin(position * div_term))
    pe = pe.at[:, 1::2].set(jnp.cos(position * div_term))
    p['pe'] = pe

    def stack(shape):
        return jnp.stack([_xavier(next(ks), shape) for _ in range(num_layers)])

    p['qw'] = stack((d_model, d_model))
    p['kw'] = stack((d_model, d_model))
    p['vw'] = stack((d_model, d_model))
    p['ow'] = stack((d_model, d_model))
    p['qb'] = jnp.zeros((num_layers, d_model), jnp.float32)
    p['kb'] = jnp.zeros((num_layers, d_model), jnp.float32)
    p['vb'] = jnp.zeros((num_layers, d_model), jnp.float32)
    p['ob'] = jnp.zeros((num_layers, d_model), jnp.float32)
    p['f1w'] = stack((d_model, dim_feedforward))
    p['f1b'] = jnp.zeros((num_layers, dim_feedforward), jnp.float32)
    p['f2w'] = stack((dim_feedforward, d_model))
    p['f2b'] = jnp.zeros((num_layers, d_model), jnp.float32)
    p['n1g'] = jnp.ones((num_layers, d_model), jnp.float32)
    p['n1b'] = jnp.zeros((num_layers, d_model), jnp.float32)
    p['n2g'] = jnp.ones((num_layers, d_model), jnp.float32)
    p['n2b'] = jnp.zeros((num_layers, d_model), jnp.float32)

    p['aw'] = _xavier(next(ks), (d_model, n_actions))
    p['ab'] = jnp.zeros((1, n_actions), jnp.float32)
    p['vhw'] = _xavier(next(ks), (d_model, 1))
    p['vhb'] = jnp.zeros((1, 1), jnp.float32)

    # Posterior rho parameters for the Bayesian layers (constant init here;
    # a trained model would supply its learned rho arrays in their place).
    for k in _BAYES_KEYS:
        p[k + '_rho'] = jnp.full_like(p[k], -5.0)
    return p


# ----------------------------- main -------------------------------------------


if __name__ == "__main__":
    B, S = 2, 8
    n_features = 4
    d_model = 32
    num_heads = 4
    num_layers = 2
    dim_feedforward = 64
    n_actions = 3

    key = jax.random.PRNGKey(0)
    k_param, k_src = jax.random.split(key)

    params = init_params(k_param,
                         n_features=n_features, d_model=d_model,
                         num_heads=num_heads, num_layers=num_layers,
                         dim_feedforward=dim_feedforward,
                         n_actions=n_actions, seq_len=S)

    src = jax.random.normal(k_src, (B, S, n_features), jnp.float32)

    action_logits, state_values, kl_div = financial_transformer_forward(
        src, params, num_heads=num_heads)

    jax.block_until_ready((action_logits, state_values, kl_div))
    assert action_logits.shape == (B, n_actions)
    assert state_values.shape == (B, 1)
    assert bool(jnp.all(jnp.isfinite(action_logits)))
    assert bool(jnp.all(jnp.isfinite(state_values)))
    assert bool(jnp.isfinite(kl_div))
    print("KERNEL_OK")
</pallas_src>

<mosaic_0001>
module attributes {stable_mosaic.version = 11 : i64} {
  func.func @embed_kernel(%arg0: i32, %arg1: memref<16x128xf32, #tpu.memory_space<vmem>>, %arg2: memref<128x128xbf16, #tpu.memory_space<vmem>>, %arg3: memref<1x128xf32, #tpu.memory_space<vmem>>, %arg4: memref<16x128xf32, #tpu.memory_space<vmem>>, %arg5: memref<16x128xf32, #tpu.memory_space<vmem>>) attributes {dimension_semantics = [#tpu.dimension_semantics<parallel>], iteration_bounds = array<i64: 1>, scalar_prefetch = 0 : i64, scratch_operands = 0 : i64, tpu.core_type = #tpu.core_type<tc>, window_params = [{transform_indices = @transform_0, window_bounds = array<i64: 16, 128>}, {pipeline_mode = #tpu.pipeline_mode<synchronous>, transform_indices = @transform_1, window_bounds = array<i64: 128, 128>}, {pipeline_mode = #tpu.pipeline_mode<synchronous>, transform_indices = @transform_2, window_bounds = array<i64: 1, 128>}, {pipeline_mode = #tpu.pipeline_mode<synchronous>, transform_indices = @transform_3, window_bounds = array<i64: 16, 128>}, {transform_indices = @transform_4, window_bounds = array<i64: 16, 128>}]} {
    %c0 = arith.constant 0 : index
    %c0_0 = arith.constant 0 : index
    %0 = vector.load %arg1[%c0, %c0_0] : memref<16x128xf32, #tpu.memory_space<vmem>>, vector<16x128xf32>
    %1 = arith.truncf %0 : vector<16x128xf32> to vector<16x128xbf16>
    %c0_1 = arith.constant 0 : index
    %c0_2 = arith.constant 0 : index
    %2 = vector.load %arg2[%c0_1, %c0_2] : memref<128x128xbf16, #tpu.memory_space<vmem>>, vector<128x128xbf16>
    %cst = arith.constant dense<0.000000e+00> : vector<16x128xf32>
    %3 = tpu.matmul %1, %2, %cst {dimension_numbers = #tpu.dot_dimension_numbers<[1], [0], [0], [1], [0, 0, 1, 1], [], []>} : vector<16x128xbf16>, vector<128x128xbf16>, vector<16x128xf32> -> vector<16x128xf32>
    %c0_3 = arith.constant 0 : index
    %c0_4 = arith.constant 0 : index
    %4 = vector.load %arg3[%c0_3, %c0_4] : memref<1x128xf32, #tpu.memory_space<vmem>>, vector<1x128xf32>
    %5 = vector.broadcast %4 : vector<1x128xf32> to vector<16x128xf32>
    %6 = arith.addf %3, %5 : vector<16x128xf32>
    %c0_5 = arith.constant 0 : index
    %c0_6 = arith.constant 0 : index
    %7 = vector.load %arg4[%c0_5, %c0_6] : memref<16x128xf32, #tpu.memory_space<vmem>>, vector<16x128xf32>
    %8 = arith.addf %6, %7 : vector<16x128xf32>
    %c0_7 = arith.constant 0 : index
    %c0_8 = arith.constant 0 : index
    %9 = vector.load %arg5[%c0_7, %c0_8] : memref<16x128xf32, #tpu.memory_space<vmem>>, vector<16x128xf32>
    tpu.vector_store %arg5[%c0_7, %c0_8], %8 {strides = array<i32>} : memref<16x128xf32, #tpu.memory_space<vmem>>, vector<16x128xf32>,
    return
  }
  func.func @transform_0(%arg0: i32) -> (i32, i32) {
    %c0_i32 = arith.constant 0 : i32
    %c0_i32_0 = arith.constant 0 : i32
    return %arg0, %c0_i32 : i32, i32
  }
  func.func @transform_1(%arg0: i32) -> (i32, i32) {
    %c0_i32 = arith.constant 0 : i32
    %c0_i32_0 = arith.constant 0 : i32
    %c0_i32_1 = arith.constant 0 : i32
    return %c0_i32, %c0_i32_0 : i32, i32
  }
  func.func @transform_2(%arg0: i32) -> (i32, i32) {
    %c0_i32 = arith.constant 0 : i32
    %c0_i32_0 = arith.constant 0 : i32
    %c0_i32_1 = arith.constant 0 : i32
    return %c0_i32, %c0_i32_0 : i32, i32
  }
  func.func @transform_3(%arg0: i32) -> (i32, i32) {
    %c0_i32 = arith.constant 0 : i32
    %c0_i32_0 = arith.constant 0 : i32
    %c0_i32_1 = arith.constant 0 : i32
    return %c0_i32, %c0_i32_0 : i32, i32
  }
  func.func @transform_4(%arg0: i32) -> (i32, i32) {
    %c0_i32 = arith.constant 0 : i32
    %c0_i32_0 = arith.constant 0 : i32
    return %arg0, %c0_i32 : i32, i32
  }
}

</mosaic_0001>

<bundles_post_ra>
// kernel: tpu_custom_call.1
= control target key start
LH: loop header
LB: loop body
LE: loop exit
PB: predicated region body
PF: predicated region fallthrough
CT: control target
= control target key end

     0   :  { %9 = vsyncpa [#allocation3], 0  ;;  %s444_s0 = inlined_call_operand.hbm [shape: f32[16,128], index: 0, kind: input, shape index: {}]   ;;  %s445_s1 = inlined_call_operand.hbm [shape: bf16[128,128], index: 1, kind: input, shape index: {}]   ;;  %s446_s2 = inlined_call_operand.vmem [shape: f32[1,128], index: 2, kind: input, shape index: {}]   ;;  %s447_s3 = inlined_call_operand.hbm [shape: f32[16,128], index: 3, kind: input, shape index: {}]   ;;  %s448_s4 = inlined_call_operand.hbm [shape: f32[16,128], index: 4, kind: output, shape index: {}]  }
   0x1   :  { %10 = vsyncpa [#allocation6], 0 }
   0x2   :  { %11 = vsyncpa [#allocation4], 0  ;;  %s349_s15 = smov [#allocation5]   ;;  %s255_s19 = scalar_lea.hbm %s445_s1, 1024 }
   0x3   :  { %s29_s16 = sshll.u32 %s349_s15, 4  ;;  %p256_p0 = scmp.ne.s32.totalorder %s445_s1, %s255_s19  ;;  %s30_s16 = int_to_ptr.vmem [resolvable:$true] %s29_s16 }
   0x4   :  { %p259_p1 = scmp.lt.u32.totalorder %s255_s19, %s445_s1 }
   0x6   :  { %p261_p2 = pnand %p259_p1, %p256_p0 }
   0x8   :  { %264 = shalt.err (!%p261_p2)
}
   0x9   :  { %s265_s24 = scalar_lea.vmem %s30_s16, 1024  ;;  %p270_p4 = scmp.lt.s32.totalorder %s30_s16, %s30_s16 }
   0xa   :  { %p266_p3 = scmp.ne.s32.totalorder %s30_s16, %s265_s24  ;;  %p271_p5 = scmp.lt.s32.totalorder %s265_s24, %s265_s24 }
   0xc   :  { %p272_p6 = por %p271_p5, %p270_p4 }
   0xe   :  { %p273_p7 = pnand %p272_p6, %p266_p3 }
  0x10   :  { %276 = shalt.err (!%p273_p7)
}
  0x11   :  { %s350_s25 = smov 64   ;;  %s351_s26 = smov 4  }
  0x12   :  { %35 = dma.hbm_to_vmem [thread:$0]  %s445_s1, 1024, %s30_s16, [#allocation6], %s350_s25, %s350_s25, %s351_s26  }
  0x13   :  { %s352_s29 = smov [#allocation2]   ;;  %s277_s7 = scalar_lea.hbm %s444_s0, 256 }
  0x14   :  { %s17_s30 = sshll.u32 %s352_s29, 4  ;;  %p278_p8 = scmp.ne.s32.totalorder %s444_s0, %s277_s7  ;;  %s18_s30 = int_to_ptr.vmem [resolvable:$true] %s17_s30 }
  0x15   :  { %p281_p9 = scmp.lt.u32.totalorder %s277_s7, %s444_s0 }
  0x17   :  { %p283_p10 = pnand %p281_p9, %p278_p8 }
  0x19   :  { %286 = shalt.err (!%p283_p10)
}
  0x1a   :  { %s287_s12 = scalar_lea.vmem %s18_s30, 256  ;;  %p292_p12 = scmp.lt.s32.totalorder %s18_s30, %s18_s30 }
  0x1b   :  { %p288_p11 = scmp.ne.s32.totalorder %s18_s30, %s287_s12  ;;  %p293_p13 = scmp.lt.s32.totalorder %s287_s12, %s287_s12 }
  0x1d   :  { %p294_p0 = por %p293_p13, %p292_p12 }
  0x1f   :  { %p295_p1 = pnand %p294_p0, %p288_p11 }
  0x21   :  { %298 = shalt.err (!%p295_p1)
}
  0x22   :  { %s353_s1 = smov 128   ;;  %s354_s13 = smov 8  }
  0x23   :  { %23 = dma.hbm_to_vmem [thread:$0]  %s444_s0, 256, %s18_s30, [#allocation3], %s353_s1, %s353_s1, %s354_s13  }
  0x24   :  { %s355_s16 = smov [#allocation7]   ;;  %s299_s20 = scalar_lea.hbm %s447_s3, 256 }
  0x25   :  { %s43_s17 = sshll.u32 %s355_s16, 4  ;;  %p300_p2 = scmp.ne.s32.totalorder %s447_s3, %s299_s20  ;;  %s44_s17 = int_to_ptr.vmem [resolvable:$true] %s43_s17 }
  0x26   :  { %p303_p3 = scmp.lt.u32.totalorder %s299_s20, %s447_s3 }
  0x28   :  { %p305_p4 = pnand %p303_p3, %p300_p2 }
  0x2a   :  { %308 = shalt.err (!%p305_p4)
}
  0x2b   :  { %s309_s25 = scalar_lea.vmem %s44_s17, 256  ;;  %p314_p6 = scmp.lt.s32.totalorder %s44_s17, %s44_s17 }
  0x2c   :  { %p310_p5 = scmp.ne.s32.totalorder %s44_s17, %s309_s25  ;;  %p315_p7 = scmp.lt.s32.totalorder %s309_s25, %s309_s25 }
  0x2e   :  { %p316_p8 = por %p315_p7, %p314_p6 }
  0x30   :  { %p317_p9 = pnand %p316_p8, %p310_p5 }
  0x32   :  { %320 = shalt.err (!%p317_p9)
}
  0x33   :  { %49 = dma.hbm_to_vmem [thread:$0]  %s447_s3, 256, %s44_s17, [#allocation6], %s353_s1, %s353_s1, %s354_s13  }
  0x34   :  { %343 = dma.done.wait [#allocation3], 256  }
  0x35   :  { %344 = vsyncadd [#allocation3], 4294967040 }
  0x36   :  { %345 = dma.done.wait [#allocation6], 1280  }
  0x37   :  { %346 = vsyncadd [#allocation6], 4294966016  ;;  %v356_v0 = vmov 0.0   ;;  %vm357_vm0 = vmmov 0   ;;  %v247_v1 = vld [vmem:[#allocation5] sm:$0xff]   ;;  %v248_v2 = vld [vmem:[#allocation5 + $0x8] sm:$0xff]  }
  0x38   :  { %217 = vmatprep.subr.bf16.mxu0 %v356_v0  ;;  %233 = vmatprep.mubr.msk.bf16.mxu0 %vm357_vm0, %v356_v0  ;;  %v249_v3 = vld [vmem:[#allocation5 + $0x10] sm:$0xff]   ;;  %v250_v4 = vld [vmem:[#allocation5 + $0x18] sm:$0xff]   ;;  %v251_v5 = vld [vmem:[#allocation5 + $0x20] sm:$0xff]   ;;  %s358_s28 = smov [#allocation8]  }
  0x39   :  { %218 = vmatpush3.bf16.msra.mxu0 %v247_v1  ;;  %v252_v6 = vld [vmem:[#allocation5 + $0x28] sm:$0xff]   ;;  %v253_v7 = vld [vmem:[#allocation5 + $0x30] sm:$0xff]   ;;  %v254_v8 = vld [vmem:[#allocation5 + $0x38] sm:$0xff]   ;;  %s186_s29 = sshll.u32 %s358_s28, 4  ;;  %s187_s29 = int_to_ptr.vmem [resolvable:$true] %s186_s29 }
  0x3a   :  { %219 = vmatprep.subr.bf16.mxu0 %v356_v0  ;;  %v60_v9 = vld [vmem:[#allocation2] sm:$0xff]  ;;  %v61_v10 = vld [vmem:[#allocation2 + $0x8] sm:$0xff]  ;;  %v175_v14 = vld [vmem:[#allocation7] sm:$0xff]  ;;  %s321_s30 = scalar_lea.vmem %s187_s29, 256  ;;  %p326_p11 = scmp.lt.s32.totalorder %s187_s29, %s187_s29 }
  0x3b   :  { %v62_v11 = vpack.c.bf16 %v61_v10, %v60_v9  ;;  %v199_v12 = vld [vmem:[%s446_s2] ss:$0 sm:$0xff]  ;;  %v176_v18 = vld [vmem:[#allocation7 + $0x8] sm:$0xff]  ;;  %p322_p10 = scmp.ne.s32.totalorder %s187_s29, %s321_s30  ;;  %p327_p12 = scmp.lt.s32.totalorder %s321_s30, %s321_s30 }
  0x3d   :  { %220 = vmatpush3.bf16.msra.mxu0 %v248_v2  ;;  %p328_p13 = por %p327_p12, %p326_p11 }
  0x3e   :  { %221 = vmatprep.subr.bf16.mxu0 %v356_v0 }
  0x3f   :  { %p329_p0 = pnand %p328_p13, %p322_p10 }
  0x41   :  { %222 = vmatpush3.bf16.msra.mxu0 %v249_v3 }
  0x42   :  { %223 = vmatprep.subr.bf16.mxu0 %v356_v0 }
  0x45   :  { %224 = vmatpush3.bf16.msra.mxu0 %v250_v4 }
  0x46   :  { %225 = vmatprep.subr.bf16.mxu0 %v356_v0 }
  0x49   :  { %226 = vmatpush3.bf16.msra.mxu0 %v251_v5 }
  0x4a   :  { %227 = vmatprep.subr.bf16.mxu0 %v356_v0 }
  0x4d   :  { %228 = vmatpush3.bf16.msra.mxu0 %v252_v6 }
  0x4e   :  { %229 = vmatprep.subr.bf16.mxu0 %v356_v0 }
  0x51   :  { %230 = vmatpush3.bf16.msra.mxu0 %v253_v7 }
  0x52   :  { %231 = vmatprep.subr.bf16.mxu0 %v356_v0 }
  0x55   :  { %232 = vmatpush3.bf16.msra.mxu0 %v254_v8 }
  0x58   :  { %234 = vmatmul.mubr.bf16.vlgmr.msra.gmra.mrb[0].mxu0 %v62_v11 }
 0x12b   :  { %v168_v13 = vpop.f32.mrb[0].mxu0 }
 0x12c   :  { %v169_v15 = vadd.f32 %v199_v12, %v168_v13  ;;  %v235_v16 = vpop.f32.mrb[1].mxu0 }
 0x12d   :  { %v171_v17 = vpop.f32.mrb[2].mxu0 }
 0x12e   :  { %v177_v19 = vadd.f32 %v175_v14, %v169_v15  ;;  %v172_v20 = vadd.f32 %v199_v12, %v171_v17  ;;  %v236_v21 = vpop.f32.mrb[3].mxu0 }
 0x130   :  { %179 = vst [vmem:[#allocation8] sm:$0xff] %v177_v19  ;;  %v178_v22 = vadd.f32 %v176_v18, %v172_v20 }
 0x132   :  { %180 = vst [vmem:[#allocation8 + $0x8] sm:$0xff] %v178_v22 }
 0x133   :  { %332 = shalt.err (!%p329_p0)
}
 0x134   :  { %s333_s6 = scalar_lea.hbm %s448_s4, 256 }
 0x135   :  { %p334_p1 = scmp.ne.s32.totalorder %s448_s4, %s333_s6  ;;  %p337_p2 = scmp.lt.u32.totalorder %s333_s6, %s448_s4 }
 0x137   :  { %p339_p3 = pnand %p337_p2, %p334_p1 }
 0x139   :  { %342 = shalt.err (!%p339_p3)
}
 0x13a   :  { %192 = dma.vmem_to_hbm [thread:$0]  %s187_s29, 256, %s448_s4, [#allocation4], %s353_s1, %s353_s1, %s354_s13  }
 0x13b   :  { %347 = dma.done.wait [#allocation4], 256  }
 0x13c   :  { %348 = vsyncadd [#allocation4], 4294967040 }
 0x13d   :  { %196 = vsyncpa [#allocation3], 1 }
 0x13e   :  { %197 = vsyncpa [#allocation6], 1 }
 0x13f   :  { %198 = vsyncpa [#allocation4], 1 }

</bundles_post_ra>
